<compile_context>
chip_gen: v5e
topology: v5e:2x2
jax: 0.10.0
libtpu: 0.0.40
codegen_flags: <defaults>
</compile_context>

<pallas_src>
import functools
import math

import jax
import jax.numpy as jnp
from jax.experimental import pallas as pl
from jax.experimental.pallas import tpu as pltpu


def _round_up(x, m):
    return ((x + m - 1) // m) * m


def _sublane_multiple(dtype):
    # 8 for 4-byte, 16 for 2-byte, 32 for 1-byte dtypes (sublane packing).
    return max(8, 32 // jnp.dtype(dtype).itemsize)


def _pick_divisor(total, cap, quantum):
    """Largest multiple of `quantum` that divides `total` and is <= cap."""
    best = quantum
    t = quantum
    limit = min(total, cap)
    while t <= limit:
        if total % t == 0:
            best = t
        t += quantum
    return best


# --------------------------------------------------------------------------
# Generation-aware VMEM budgets.
# --------------------------------------------------------------------------
try:
    _VMEM_CAPACITY = int(pltpu.get_tpu_info().vmem_capacity_bytes)
except Exception:  # conservative default (v7x = 64 MiB per TC)
    _VMEM_CAPACITY = 64 * 1024 * 1024

# Fused (all-weights-resident) cutoff: ~75% of physical VMEM.
_FUSED_VMEM_BUDGET = (3 * _VMEM_CAPACITY) // 4
# Hard cap for vmem_limit_bytes: stay below the physical ceiling.
_VMEM_LIMIT_CAP = min((7 * _VMEM_CAPACITY) // 8, 112 * 1024 * 1024)


# --------------------------------------------------------------------------
# Fused whole-chain kernel: native-dtype MXU matmuls, f32 accumulation,
# activation stays on-chip between layers.
# --------------------------------------------------------------------------
def _make_fused_kernel(num_layers, has_bias):
    def kernel(*refs):
        # refs = (x_ref, [w_0, (b_0)], [w_1, (b_1)], ..., o_ref)
        x = refs[0][...]
        compute_dtype = x.dtype
        idx = 1
        for li in range(num_layers):
            w = refs[idx][...]
            idx += 1
            y = jnp.dot(x, w, preferred_element_type=jnp.float32)
            if has_bias:
                y = y + refs[idx][...].astype(jnp.float32)
                idx += 1
            # Keep subsequent layers in the native input dtype so the MXU
            # stays in bf16/fp8 mode (no-op for f32 inputs).
            x = y.astype(compute_dtype) if li + 1 < num_layers else y
        o_ref = refs[idx]
        o_ref[...] = x.astype(o_ref.dtype)

    return kernel


# --------------------------------------------------------------------------
# Tiled per-layer fallback (reduction axis last, f32 VMEM accumulator).
# --------------------------------------------------------------------------
def _tiled_matmul_kernel(x_ref, w_ref, o_ref, acc_ref):
    @pl.when(pl.program_id(2) == 0)
    def _():
        acc_ref[...] = jnp.zeros_like(acc_ref)

    acc_ref[...] += jnp.dot(
        x_ref[...], w_ref[...], preferred_element_type=jnp.float32
    )

    @pl.when(pl.program_id(2) == pl.num_programs(2) - 1)
    def _():
        o_ref[...] = acc_ref[...].astype(o_ref.dtype)


def _tiled_matmul_bias_kernel(x_ref, w_ref, b_ref, o_ref, acc_ref):
    @pl.when(pl.program_id(2) == 0)
    def _():
        acc_ref[...] = jnp.zeros_like(acc_ref)

    acc_ref[...] += jnp.dot(
        x_ref[...], w_ref[...], preferred_element_type=jnp.float32
    )

    @pl.when(pl.program_id(2) == pl.num_programs(2) - 1)
    def _():
        o_ref[...] = (acc_ref[...] + b_ref[...].astype(jnp.float32)).astype(
            o_ref.dtype
        )


def _weight_spec(tk, tn, extra_buffering):
    idx_map = lambda i, j, k: (k, j)
    if extra_buffering:
        # Deeper pipelining on the weight stream when the kernel is
        # weight-DMA bound (single batch tile).
        try:
            return pl.BlockSpec((tk, tn), idx_map, pipeline_mode=pl.Buffered(3))
        except TypeError:
            pass
    return pl.BlockSpec((tk, tn), idx_map)


def _tiled_linear_padded(xp, wt, bias_pad, tm):
    """y_pad = xp @ wt (+ bias); all operands already x128-padded."""
    mp, k128 = xp.shape
    _, n128 = wt.shape

    # Tiles chosen as exact divisors of the padded dims -> no re-padding.
    tk = _pick_divisor(k128, 1024, 128)
    tn = _pick_divisor(n128, 512, 128)
    grid = (mp // tm, n128 // tn, k128 // tk)

    x_spec = pl.BlockSpec((tm, tk), lambda i, j, k: (i, k))
    w_spec = _weight_spec(tk, tn, extra_buffering=(grid[0] == 1))
    o_spec = pl.BlockSpec((tm, tn), lambda i, j, k: (i, j))

    isz_x = jnp.dtype(xp.dtype).itemsize
    isz_w = jnp.dtype(wt.dtype).itemsize
    foot = (
        2 * tm * tk * isz_x
        + 3 * tk * tn * isz_w
        + 2 * tm * tn * isz_x
        + tm * tn * 4
        + (2 * tn * 4 if bias_pad is not None else 0)
    )
    vmem_limit = int(min(_VMEM_LIMIT_CAP, max(32 * 2**20, 2 * foot)))
    cparams = pltpu.CompilerParams(
        dimension_semantics=("parallel", "parallel", "arbitrary"),
        vmem_limit_bytes=vmem_limit,
    )
    scratch = [pltpu.VMEM((tm, tn), jnp.float32)]
    out_shape = jax.ShapeDtypeStruct((mp, n128), xp.dtype)

    if bias_pad is None:
        return pl.pallas_call(
            _tiled_matmul_kernel,
            out_shape=out_shape,
            grid=grid,
            in_specs=[x_spec, w_spec],
            out_specs=o_spec,
            scratch_shapes=scratch,
            compiler_params=cparams,
        )(xp, wt)

    b_spec = pl.BlockSpec((1, tn), lambda i, j, k: (0, j))
    return pl.pallas_call(
        _tiled_matmul_bias_kernel,
        out_shape=out_shape,
        grid=grid,
        in_specs=[x_spec, w_spec, b_spec],
        out_specs=o_spec,
        scratch_shapes=scratch,
        compiler_params=cparams,
    )(xp, wt, bias_pad)


# --------------------------------------------------------------------------
# Parameter handling
# --------------------------------------------------------------------------
def init_model_params(
    key,
    model_linear_layers_dims,
    model_dead_layer_dims=None,
    bias=False,
    dtype=jnp.float32,
):
    """Deterministic init mimicking nn.Linear default (uniform +/- 1/sqrt(in))."""
    params = {"linear_layers": [], "dead_layers": []}

    def _init_linear(k, in_f, out_f, with_bias):
        kw, kb = jax.random.split(k)
        bound = 1.0 / math.sqrt(in_f)
        w = jax.random.uniform(kw, (out_f, in_f), dtype, -bound, bound)
        b = (
            jax.random.uniform(kb, (out_f,), dtype, -bound, bound)
            if with_bias
            else None
        )
        return w, b

    dims = list(model_linear_layers_dims)
    for a, b_dim in zip(dims[:-1], dims[1:]):
        key, sub = jax.random.split(key)
        params["linear_layers"].append(_init_linear(sub, a, b_dim, bias))

    if model_dead_layer_dims is not None:
        ddims = list(model_dead_layer_dims)
        for a, b_dim in zip(ddims[:-1], ddims[1:]):
            key, sub = jax.random.split(key)
            # Dead layers never have bias and never participate in forward.
            params["dead_layers"].append(_init_linear(sub, a, b_dim, False))

    return params


def pack_linear_params(linear_layers):
    """Pre-transpose W to (in, out) and zero-pad feature dims to x128 once."""
    has_bias = linear_layers[0][1] is not None
    real_dims = [linear_layers[0][0].shape[1]] + [
        w.shape[0] for w, _ in linear_layers
    ]
    wts, biases = [], []
    for w, b in linear_layers:
        out_f, in_f = w.shape
        ip, op = _round_up(in_f, 128), _round_up(out_f, 128)
        wt = jnp.zeros((ip, op), w.dtype).at[:in_f, :out_f].set(w.T)
        wts.append(wt)
        if has_bias:
            biases.append(jnp.zeros((1, op), b.dtype).at[0, :out_f].set(b))
    return tuple(wts), (tuple(biases) if has_bias else None), tuple(real_dims)


# --------------------------------------------------------------------------
# Forward
# --------------------------------------------------------------------------
@functools.partial(jax.jit, static_argnames=("real_dims", "force_tiled"))
def model_forward(x, wts, biases, real_dims, force_tiled=False):
    batch = x.shape[0]
    num_layers = len(wts)
    has_bias = biases is not None
    itemsize = jnp.dtype(x.dtype).itemsize
    sub = _sublane_multiple(x.dtype)

    # Padded feature widths at each layer boundary (all x128 already).
    pdims = [w.shape[0] for w in wts] + [wts[-1].shape[1]]
    bp = max(sub, _round_up(batch, sub))

    # Footprint estimate with real element sizes.
    w_bytes = sum(int(w.size) * jnp.dtype(w.dtype).itemsize for w in wts)
    b_bytes = (
        sum(int(b.size) * jnp.dtype(b.dtype).itemsize for b in biases)
        if has_bias
        else 0
    )
    tb = _pick_divisor(bp, 256, sub)  # batch tile for the fused path
    est = (
        w_bytes
        + b_bytes
        + 2 * tb * (pdims[0] + pdims[-1]) * itemsize  # dbl-buffered x / out
        + 2 * tb * max(pdims) * 4  # f32 intermediate headroom
    )

    if (not force_tiled) and est <= _FUSED_VMEM_BUDGET:
        # ---- fused path: one pallas_call, batch grid axis (megacore on v7x),
        # weights resident in VMEM (constant block index), activation on-chip.
        xp = jnp.zeros((bp, pdims[0]), x.dtype).at[:batch, : real_dims[0]].set(x)
        ops = [xp]
        in_specs = [pl.BlockSpec((tb, pdims[0]), lambda i: (i, 0))]
        for li in range(num_layers):
            ops.append(wts[li])
            in_specs.append(pl.BlockSpec(wts[li].shape, lambda i: (0, 0)))
            if has_bias:
                ops.append(biases[li])
                in_specs.append(pl.BlockSpec(biases[li].shape, lambda i: (0, 0)))
        out_spec = pl.BlockSpec((tb, pdims[-1]), lambda i: (i, 0))

        vmem_limit = int(min(_VMEM_LIMIT_CAP, max(32 * 2**20, 2 * est)))
        out_p = pl.pallas_call(
            _make_fused_kernel(num_layers, has_bias),
            out_shape=jax.ShapeDtypeStruct((bp, pdims[-1]), x.dtype),
            grid=(bp // tb,),
            in_specs=in_specs,
            out_specs=out_spec,
            compiler_params=pltpu.CompilerParams(
                dimension_semantics=("parallel",),
                vmem_limit_bytes=vmem_limit,
            ),
        )(*ops)
        return out_p[:batch, : real_dims[-1]]

    # ---- tiled fallback: pad the activation ONCE, keep it padded end-to-end.
    # TODO(synk): a layer-streamed (weights via emit_pipeline) fused variant
    # would further overlap weight DMA with compute for non-uniform layer dims.
    mp = bp
    tm = _pick_divisor(mp, 512, sub)
    act = jnp.zeros((mp, pdims[0]), x.dtype).at[:batch, : real_dims[0]].set(x)
    for li in range(num_layers):
        act = _tiled_linear_padded(
            act, wts[li], biases[li] if has_bias else None, tm
        )
    return act[:batch, : real_dims[-1]]


def _reference_forward(x, params):
    out = x
    for w, b in params["linear_layers"]:
        out = out @ w.T
        if b is not None:
            out = out + b
    return out


if __name__ == "__main__":
    # Shapes consistent with the module:
    #   model_linear_layers_dims = (32, 16, 8)  -> Linear(32,16), Linear(16,8)
    #   model_dead_layer_dims    = (10, 10)     -> one dead Linear(10,10), unused
    batch = 2
    model_linear_layers_dims = (32, 16, 8)
    model_dead_layer_dims = (10, 10)

    key = jax.random.PRNGKey(0)
    key, xkey = jax.random.split(key)
    x = jax.random.normal(
        xkey, (batch, model_linear_layers_dims[0]), dtype=jnp.float32
    )

    ok = True
    for bias in (False, True):
        key, pkey = jax.random.split(key)
        params = init_model_params(
            pkey, model_linear_layers_dims, model_dead_layer_dims, bias=bias
        )
        wts, biases, real_dims = pack_linear_params(params["linear_layers"])
        ref = _reference_forward(x, params)

        # Fused single-kernel path (f32).
        out = jax.block_until_ready(model_forward(x, wts, biases, real_dims))
        ok &= out.shape == (batch, model_linear_layers_dims[-1])
        ok &= bool(jnp.allclose(out, ref, atol=1e-5, rtol=1e-5))

        # Tiled fallback path (exercised explicitly for correctness coverage).
        out_t = jax.block_until_ready(
            model_forward(x, wts, biases, real_dims, force_tiled=True)
        )
        ok &= bool(jnp.allclose(out_t, ref, atol=1e-5, rtol=1e-5))

    # Larger batch exercises the batch-gridded fused path (grid > 1).
    key, xkey2, pkey2 = jax.random.split(key, 3)
    x_big = jax.random.normal(
        xkey2, (512, model_linear_layers_dims[0]), dtype=jnp.float32
    )
    params_b = init_model_params(
        pkey2, model_linear_layers_dims, model_dead_layer_dims, bias=True
    )
    wts_b, biases_b, rd_b = pack_linear_params(params_b["linear_layers"])
    out_big = jax.block_until_ready(model_forward(x_big, wts_b, biases_b, rd_b))
    ok &= bool(
        jnp.allclose(out_big, _reference_forward(x_big, params_b), atol=1e-4, rtol=1e-4)
    )

    # Native bf16 path (MXU-native matmuls, f32 accumulation).
    params_h = jax.tree_util.tree_map(
        lambda a: a.astype(jnp.bfloat16), params_b
    )
    x_h = x.astype(jnp.bfloat16)
    wts_h, biases_h, rd_h = pack_linear_params(params_h["linear_layers"])
    out_h = jax.block_until_ready(model_forward(x_h, wts_h, biases_h, rd_h))
    ref_h = _reference_forward(
        x_h.astype(jnp.float32),
        jax.tree_util.tree_map(lambda a: a.astype(jnp.float32), params_h),
    )
    ok &= bool(
        jnp.allclose(out_h.astype(jnp.float32), ref_h, atol=3e-2, rtol=3e-2)
    )

    assert ok
    print("KERNEL_OK")
</pallas_src>

<mosaic_0001>
module attributes {stable_mosaic.version = 11 : i64} {
  func.func @kernel(%arg0: i32, %arg1: memref<8x128xf32, #tpu.memory_space<vmem>>, %arg2: memref<128x128xf32, #tpu.memory_space<vmem>>, %arg3: memref<128x128xf32, #tpu.memory_space<vmem>>, %arg4: memref<8x128xf32, #tpu.memory_space<vmem>>) attributes {dimension_semantics = [#tpu.dimension_semantics<parallel>], iteration_bounds = array<i64: 1>, scalar_prefetch = 0 : i64, scratch_operands = 0 : i64, tpu.core_type = #tpu.core_type<tc>, window_params = [{transform_indices = @transform_0, window_bounds = array<i64: 8, 128>}, {pipeline_mode = #tpu.pipeline_mode<synchronous>, transform_indices = @transform_1, window_bounds = array<i64: 128, 128>}, {pipeline_mode = #tpu.pipeline_mode<synchronous>, transform_indices = @transform_2, window_bounds = array<i64: 128, 128>}, {transform_indices = @transform_3, window_bounds = array<i64: 8, 128>}]} {
    %c0 = arith.constant 0 : index
    %c0_0 = arith.constant 0 : index
    %0 = vector.load %arg1[%c0, %c0_0] : memref<8x128xf32, #tpu.memory_space<vmem>>, vector<8x128xf32>
    %c0_1 = arith.constant 0 : index
    %c0_2 = arith.constant 0 : index
    %1 = vector.load %arg2[%c0_1, %c0_2] : memref<128x128xf32, #tpu.memory_space<vmem>>, vector<128x128xf32>
    %cst = arith.constant dense<0.000000e+00> : vector<8x128xf32>
    %2 = tpu.matmul %0, %1, %cst {dimension_numbers = #tpu.dot_dimension_numbers<[1], [0], [0], [1], [0, 0, 1, 1], [], []>} : vector<8x128xf32>, vector<128x128xf32>, vector<8x128xf32> -> vector<8x128xf32>
    %c0_3 = arith.constant 0 : index
    %c0_4 = arith.constant 0 : index
    %3 = vector.load %arg3[%c0_3, %c0_4] : memref<128x128xf32, #tpu.memory_space<vmem>>, vector<128x128xf32>
    %cst_5 = arith.constant dense<0.000000e+00> : vector<8x128xf32>
    %4 = tpu.matmul %2, %3, %cst_5 {dimension_numbers = #tpu.dot_dimension_numbers<[1], [0], [0], [1], [0, 0, 1, 1], [], []>} : vector<8x128xf32>, vector<128x128xf32>, vector<8x128xf32> -> vector<8x128xf32>
    %c0_6 = arith.constant 0 : index
    %c0_7 = arith.constant 0 : index
    %5 = vector.load %arg4[%c0_6, %c0_7] : memref<8x128xf32, #tpu.memory_space<vmem>>, vector<8x128xf32>
    tpu.vector_store %arg4[%c0_6, %c0_7], %4 {strides = array<i32>} : memref<8x128xf32, #tpu.memory_space<vmem>>, vector<8x128xf32>,
    return
  }
  func.func @transform_0(%arg0: i32) -> (i32, i32) {
    %c0_i32 = arith.constant 0 : i32
    %c0_i32_0 = arith.constant 0 : i32
    return %arg0, %c0_i32 : i32, i32
  }
  func.func @transform_1(%arg0: i32) -> (i32, i32) {
    %c0_i32 = arith.constant 0 : i32
    %c0_i32_0 = arith.constant 0 : i32
    %c0_i32_1 = arith.constant 0 : i32
    return %c0_i32, %c0_i32_0 : i32, i32
  }
  func.func @transform_2(%arg0: i32) -> (i32, i32) {
    %c0_i32 = arith.constant 0 : i32
    %c0_i32_0 = arith.constant 0 : i32
    %c0_i32_1 = arith.constant 0 : i32
    return %c0_i32, %c0_i32_0 : i32, i32
  }
  func.func @transform_3(%arg0: i32) -> (i32, i32) {
    %c0_i32 = arith.constant 0 : i32
    %c0_i32_0 = arith.constant 0 : i32
    return %arg0, %c0_i32 : i32, i32
  }
}

</mosaic_0001>

<bundles_post_ra>
// kernel: model_forward.1
= control target key start
LH: loop header
LB: loop body
LE: loop exit
PB: predicated region body
PF: predicated region fallthrough
CT: control target
= control target key end

     0   :  { %8 = vsyncpa [#allocation3], 0  ;;  %s218_s0 = inlined_call_operand.vmem [shape: f32[8,128], index: 0, kind: input, shape index: {}]   ;;  %s219_s1 = inlined_call_operand.hbm [shape: f32[128,128], index: 1, kind: input, shape index: {}]   ;;  %s220_s2 = inlined_call_operand.hbm [shape: f32[128,128], index: 2, kind: input, shape index: {}]   ;;  %s221_s3 = inlined_call_operand.vmem [shape: f32[8,128], index: 3, kind: output, shape index: {}]  }
   0x1   :  { %s16_s14 = sshll.u32 %s219_s1, 4  ;;  %s17_s14 = int_to_ptr.hbm [resolvable:$true] %s16_s14 }
   0x2   :  { %9 = vsyncpa [#allocation5], 0  ;;  %s182_s15 = smov [#allocation2]   ;;  %s29_s19 = sshll.u32 %s220_s2, 4  ;;  %s30_s19 = int_to_ptr.hbm [resolvable:$true] %s29_s19 }
   0x3   :  { %s18_s16 = sshll.u32 %s182_s15, 4  ;;  %s183_s20 = smov 128   ;;  %s19_s16 = int_to_ptr.vmem [resolvable:$true] %s18_s16 }
   0x4   :  { %s184_s21 = smov 8   ;;  %s185_s22 = smov [#allocation4]  }
   0x5   :  { %24 = dma.hbm_to_vmem [thread:$0]  %s17_s14, 2048, %s19_s16, [#allocation3], %s183_s20, %s183_s20, %s184_s21  }
   0x6   :  { %s31_s23 = sshll.u32 %s185_s22, 4  ;;  %s32_s23 = int_to_ptr.vmem [resolvable:$true] %s31_s23 }
   0x7   :  { %37 = dma.hbm_to_vmem [thread:$0]  %s30_s19, 2048, %s32_s23, [#allocation5], %s183_s20, %s183_s20, %s184_s21  }
   0x8   :  { %178 = dma.done.wait [#allocation3], 2048  }
   0x9   :  { %179 = vsyncadd [#allocation3], 4294965248 }
   0xa   :  { %180 = dma.done.wait [#allocation5], 2048  }
   0xb   :  { %181 = vsyncadd [#allocation5], 4294965248  ;;  %v62_v0 = vld [vmem:[#allocation2 + $0x78] sm:$0xff]  ;;  %v61_v1 = vld [vmem:[#allocation2 + $0x70] sm:$0xff] }
   0xc   :  { %63 = vmatpush.msra.mxu0 %v62_v0  ;;  %v60_v2 = vld [vmem:[#allocation2 + $0x68] sm:$0xff]  ;;  %v59_v3 = vld [vmem:[#allocation2 + $0x60] sm:$0xff]  ;;  %v98_v4 = vld [vmem:[#allocation4 + $0x78] sm:$0xff] }
   0xd   :  { %v58_v5 = vld [vmem:[#allocation2 + $0x58] sm:$0xff]  ;;  %99 = vmatpush.msra.mxu1 %v98_v4  ;;  %v97_v6 = vld [vmem:[#allocation4 + $0x70] sm:$0xff]  ;;  %v96_v7 = vld [vmem:[#allocation4 + $0x68] sm:$0xff] }
   0xe   :  { %64 = vmatpush.msra.mxu0 %v61_v1  ;;  %v57_v8 = vld [vmem:[#allocation2 + $0x50] sm:$0xff]  ;;  %v95_v9 = vld [vmem:[#allocation4 + $0x60] sm:$0xff]  ;;  %v56_v10 = vld [vmem:[#allocation2 + $0x48] sm:$0xff] }
   0xf   :  { %100 = vmatpush.msra.mxu1 %v97_v6  ;;  %v94_v11 = vld [vmem:[#allocation4 + $0x58] sm:$0xff]  ;;  %v55_v12 = vld [vmem:[#allocation2 + $0x40] sm:$0xff]  ;;  %v93_v13 = vld [vmem:[#allocation4 + $0x50] sm:$0xff] }
  0x10   :  { %65 = vmatpush.msra.mxu0 %v60_v2  ;;  %v54_v14 = vld [vmem:[#allocation2 + $0x38] sm:$0xff]  ;;  %v92_v15 = vld [vmem:[#allocation4 + $0x48] sm:$0xff]  ;;  %v53_v16 = vld [vmem:[#allocation2 + $0x30] sm:$0xff] }
  0x11   :  { %101 = vmatpush.msra.mxu1 %v96_v7  ;;  %v91_v17 = vld [vmem:[#allocation4 + $0x40] sm:$0xff]  ;;  %v52_v18 = vld [vmem:[#allocation2 + $0x28] sm:$0xff]  ;;  %v90_v19 = vld [vmem:[#allocation4 + $0x38] sm:$0xff] }
  0x12   :  { %66 = vmatpush.msra.mxu0 %v59_v3  ;;  %v51_v20 = vld [vmem:[#allocation2 + $0x20] sm:$0xff]  ;;  %v89_v21 = vld [vmem:[#allocation4 + $0x30] sm:$0xff]  ;;  %v50_v22 = vld [vmem:[#allocation2 + $0x18] sm:$0xff] }
  0x13   :  { %102 = vmatpush.msra.mxu1 %v95_v9  ;;  %v88_v23 = vld [vmem:[#allocation4 + $0x28] sm:$0xff]  ;;  %v49_v24 = vld [vmem:[#allocation2 + $0x10] sm:$0xff]  ;;  %v87_v25 = vld [vmem:[#allocation4 + $0x20] sm:$0xff] }
  0x14   :  { %67 = vmatpush.msra.mxu0 %v58_v5  ;;  %v48_v26 = vld [vmem:[#allocation2 + $0x8] sm:$0xff]  ;;  %v86_v27 = vld [vmem:[#allocation4 + $0x18] sm:$0xff]  ;;  %v47_v28 = vld [vmem:[#allocation2] sm:$0xff] }
  0x15   :  { %103 = vmatpush.msra.mxu1 %v94_v11  ;;  %v46_v29 = vld [vmem:[%s218_s0] sm:$0xff]  ;;  %v85_v30 = vld [vmem:[#allocation4 + $0x10] sm:$0xff]  ;;  %v84_v31 = vld [vmem:[#allocation4 + $0x8] sm:$0xff] }
  0x16   :  { %68 = vmatpush.msra.mxu0 %v57_v8  ;;  %v83_v32 = vld [vmem:[#allocation4] sm:$0xff] }
  0x17   :  { %104 = vmatpush.msra.mxu1 %v93_v13 }
  0x18   :  { %69 = vmatpush.msra.mxu0 %v56_v10 }
  0x19   :  { %105 = vmatpush.msra.mxu1 %v92_v15 }
  0x1a   :  { %70 = vmatpush.msra.mxu0 %v55_v12 }
  0x1b   :  { %106 = vmatpush.msra.mxu1 %v91_v17 }
  0x1c   :  { %71 = vmatpush.msra.mxu0 %v54_v14 }
  0x1d   :  { %107 = vmatpush.msra.mxu1 %v90_v19 }
  0x1e   :  { %72 = vmatpush.msra.mxu0 %v53_v16 }
  0x1f   :  { %108 = vmatpush.msra.mxu1 %v89_v21 }
  0x20   :  { %73 = vmatpush.msra.mxu0 %v52_v18 }
  0x21   :  { %109 = vmatpush.msra.mxu1 %v88_v23 }
  0x22   :  { %74 = vmatpush.msra.mxu0 %v51_v20 }
  0x23   :  { %110 = vmatpush.msra.mxu1 %v87_v25 }
  0x24   :  { %75 = vmatpush.msra.mxu0 %v50_v22 }
  0x25   :  { %111 = vmatpush.msra.mxu1 %v86_v27 }
  0x26   :  { %76 = vmatpush.msra.mxu0 %v49_v24 }
  0x27   :  { %112 = vmatpush.msra.mxu1 %v85_v30 }
  0x28   :  { %77 = vmatpush.msra.mxu0 %v48_v26 }
  0x29   :  { %113 = vmatpush.msra.mxu1 %v84_v31 }
  0x2a   :  { %78 = vmatpush.msra.mxu0 %v47_v28 }
  0x2b   :  { %79 = vmatmul.f32.vlgmr.msra.gmra.mxu0 %v46_v29  ;;  %114 = vmatpush.msra.mxu1 %v83_v32 }
  0xa8   :  { %v80_v33 = vpop.f32.mrf.mxu0 }
  0xa9   :  { %115 = vmatmul.f32.vlgmr.msra.gmra.mxu1 %v80_v33 }
 0x126   :  { %v116_v34 = vpop.f32.mrf.mxu1 }
 0x127   :  { %119 = vst [vmem:[%s221_s3] sm:$0xff] %v116_v34 }
 0x128   :  { %124 = vsyncpa [#allocation3], 1 }
 0x129   :  { %125 = vsyncpa [#allocation5], 1 }

</bundles_post_ra>
